<compile_context>
chip_gen: v6e
topology: v6e:2x2x1
jax: 0.10.0
libtpu: 0.0.40
codegen_flags: <defaults>
</compile_context>

<pallas_src>
import functools

import jax
import jax.numpy as jnp
from jax.experimental import pallas as pl
from jax.experimental.pallas import tpu as pltpu

_LANE = 128
_SUBLANE = 8
_VMEM_BUDGET = 24 * (1 << 20)  # keep tiles under the smallest scoped default


def _round_up(x, m):
    return ((x + m - 1) // m) * m


def _linear_kernel(x_ref, w_ref, b_ref, o_ref):
    # One MXU matmul per (batch, out) tile; f32 accumulate; bias add on the VPU.
    acc = jnp.dot(x_ref[...], w_ref[...], preferred_element_type=jnp.float32)
    o_ref[...] = (acc + b_ref[...].astype(jnp.float32)).astype(o_ref.dtype)


def _choose_tiles(B, d_in, n_pad, in_isz, w_isz, out_isz, block_b, block_n):
    """Pick (tb, tn) so double-buffered x/out tiles + the W slab fit the budget."""
    tn = min(_round_up(min(block_n, n_pad), _LANE), n_pad)
    tb = B if B <= block_b else max(_SUBLANE, (block_b // _SUBLANE) * _SUBLANE)

    def footprint(tb_, tn_):
        return (2 * tb_ * d_in * in_isz          # x tile, double-buffered
                + 2 * tb_ * tn_ * out_isz        # out tile, double-buffered
                + 2 * d_in * tn_ * w_isz         # W slab, double-buffered
                + 2 * _SUBLANE * tn_ * w_isz)    # bias tile (sublane-padded)

    while footprint(tb, tn) > _VMEM_BUDGET:
        if tn > _LANE:
            tn = max(_LANE, _round_up(tn // 2, _LANE))
        elif tb > _SUBLANE:
            tb = max(_SUBLANE, _round_up(tb // 2, _SUBLANE))
        else:
            break
    return tb, tn, footprint(tb, tn)


@functools.partial(jax.jit, static_argnames=("block_b", "block_n"))
def classifier_forward_pallas(x, w, b, *, block_b=512, block_n=512):
    """y = x @ w + b, with w the transposed PyTorch Linear weight (in, out)."""
    B, d_in = x.shape
    d_out = w.shape[1]
    b = jnp.reshape(b, (1, d_out))  # accept raw 1-D PyTorch bias

    # Lane-pad the output dimension so stores are full, unmasked vregs.
    n_pad = _round_up(d_out, _LANE)
    if n_pad != d_out:
        w = jnp.pad(w, ((0, 0), (0, n_pad - d_out)))
        b = jnp.pad(b, ((0, 0), (0, n_pad - d_out)))

    in_isz = jnp.dtype(x.dtype).itemsize
    w_isz = jnp.dtype(w.dtype).itemsize
    out_isz = in_isz
    tb, tn, fp = _choose_tiles(B, d_in, n_pad, in_isz, w_isz, out_isz,
                               block_b, block_n)

    grid = (pl.cdiv(B, tb), pl.cdiv(n_pad, tn))
    in_specs = [
        pl.BlockSpec((tb, d_in), lambda i, j: (i, 0)),   # x: tiled over batch
        pl.BlockSpec((d_in, tn), lambda i, j: (0, j)),   # W: streamed N-slabs
        pl.BlockSpec((1, tn), lambda i, j: (0, j)),      # b: streamed N-slabs
    ]
    out_spec = pl.BlockSpec((tb, tn), lambda i, j: (i, j))

    cost = pl.CostEstimate(
        flops=2 * B * d_in * n_pad,
        transcendentals=0,
        bytes_accessed=(B * d_in * in_isz + d_in * n_pad * w_isz
                        + n_pad * w_isz + B * n_pad * out_isz),
    )
    vmem_limit = int(max(16 << 20, fp + (4 << 20)))

    out = pl.pallas_call(
        _linear_kernel,
        out_shape=jax.ShapeDtypeStruct((B, n_pad), x.dtype),
        grid=grid,
        in_specs=in_specs,
        out_specs=out_spec,
        compiler_params=pltpu.CompilerParams(
            dimension_semantics=("parallel", "parallel"),
            vmem_limit_bytes=vmem_limit),
        cost_estimate=cost,
    )(x, w, b)

    return out[:, :d_out] if n_pad != d_out else out


def classifier_forward(x, w, b):
    """Dispatcher: tiny single-tile problems are pure launch overhead in Pallas;
    let XLA fuse a plain dot there (review item), otherwise use the kernel."""
    B, d_in = x.shape
    d_out = w.shape[1]
    if B <= 128 and d_out <= 128 and d_in <= 1024:
        return x @ w + jnp.reshape(b, (1, d_out))
    return classifier_forward_pallas(x, w, b)


if __name__ == "__main__":
    key = jax.random.PRNGKey(0)

    # --- Case 1: shapes implied by the module (batch=8, in=32, out=16) ------
    B, IN_DIM, OUT_DIM = 8, 32, 16
    kx, kw, kb, k2 = jax.random.split(key, 4)
    x = jax.random.normal(kx, (B, IN_DIM), jnp.float32)
    bound = 1.0 / jnp.sqrt(jnp.float32(IN_DIM))  # nn.Linear-style init
    w = jax.random.uniform(kw, (IN_DIM, OUT_DIM), jnp.float32, -bound, bound)
    b = jax.random.uniform(kb, (OUT_DIM,), jnp.float32, -bound, bound)

    out = jax.block_until_ready(classifier_forward_pallas(x, w, b))
    ref = x @ w + b[None, :]
    assert out.shape == ref.shape
    assert jnp.allclose(out, ref, atol=2e-3, rtol=2e-3), "case 1 mismatch"

    # Dispatcher path (tiny -> fused XLA dot) also matches.
    out_d = jax.block_until_ready(classifier_forward(x, w, b))
    assert jnp.allclose(out_d, ref, atol=2e-3, rtol=2e-3), "dispatch mismatch"

    # --- Case 2: exercise N-slab streaming, batch tiling, lane padding ------
    B2, IN2, OUT2 = 200, 192, 300  # OUT2 pads to 384; ragged batch tail
    xx = jax.random.normal(k2, (B2, IN2), jnp.float32)
    ww = jax.random.normal(jax.random.fold_in(k2, 1), (IN2, OUT2), jnp.float32) * 0.05
    bb = jax.random.normal(jax.random.fold_in(k2, 2), (OUT2,), jnp.float32) * 0.05
    out2 = jax.block_until_ready(
        classifier_forward_pallas(xx, ww, bb, block_b=64, block_n=128))
    ref2 = xx @ ww + bb[None, :]
    assert out2.shape == ref2.shape
    assert jnp.allclose(out2, ref2, atol=5e-3, rtol=5e-3), "case 2 mismatch"

    # --- Case 3: bf16 operands (MXU-native path, f32 accumulation) ----------
    out3 = jax.block_until_ready(classifier_forward_pallas(
        xx.astype(jnp.bfloat16), ww.astype(jnp.bfloat16), bb.astype(jnp.bfloat16)))
    assert jnp.allclose(out3.astype(jnp.float32), ref2, atol=8e-2, rtol=8e-2), \
        "case 3 mismatch"

    print("KERNEL_OK")
</pallas_src>

<mosaic_0001>
module attributes {stable_mosaic.version = 11 : i64} {
  func.func @_linear_kernel(%arg0: i32, %arg1: i32, %arg2: memref<8x32xf32, #tpu.memory_space<vmem>>, %arg3: memref<32x128xf32, #tpu.memory_space<vmem>>, %arg4: memref<1x128xf32, #tpu.memory_space<vmem>>, %arg5: memref<8x128xf32, #tpu.memory_space<vmem>>) attributes {dimension_semantics = [#tpu.dimension_semantics<parallel>, #tpu.dimension_semantics<parallel>], iteration_bounds = array<i64: 1, 1>, scalar_prefetch = 0 : i64, scratch_operands = 0 : i64, tpu.core_type = #tpu.core_type<tc>, window_params = [{transform_indices = @transform_0, window_bounds = array<i64: 8, 32>}, {transform_indices = @transform_1, window_bounds = array<i64: 32, 128>}, {transform_indices = @transform_2, window_bounds = array<i64: 1, 128>}, {transform_indices = @transform_3, window_bounds = array<i64: 8, 128>}]} {
    %c0 = arith.constant 0 : index
    %c0_0 = arith.constant 0 : index
    %0 = vector.load %arg2[%c0, %c0_0] : memref<8x32xf32, #tpu.memory_space<vmem>>, vector<8x32xf32>
    %c0_1 = arith.constant 0 : index
    %c0_2 = arith.constant 0 : index
    %1 = vector.load %arg3[%c0_1, %c0_2] : memref<32x128xf32, #tpu.memory_space<vmem>>, vector<32x128xf32>
    %cst = arith.constant dense<0.000000e+00> : vector<8x128xf32>
    %2 = tpu.matmul %0, %1, %cst {dimension_numbers = #tpu.dot_dimension_numbers<[1], [0], [0], [1], [0, 0, 1, 1], [], []>} : vector<8x32xf32>, vector<32x128xf32>, vector<8x128xf32> -> vector<8x128xf32>
    %c0_3 = arith.constant 0 : index
    %c0_4 = arith.constant 0 : index
    %3 = vector.load %arg4[%c0_3, %c0_4] : memref<1x128xf32, #tpu.memory_space<vmem>>, vector<1x128xf32>
    %4 = vector.broadcast %3 : vector<1x128xf32> to vector<8x128xf32>
    %5 = arith.addf %2, %4 : vector<8x128xf32>
    %c0_5 = arith.constant 0 : index
    %c0_6 = arith.constant 0 : index
    %6 = vector.load %arg5[%c0_5, %c0_6] : memref<8x128xf32, #tpu.memory_space<vmem>>, vector<8x128xf32>
    tpu.vector_store %arg5[%c0_5, %c0_6], %5 {strides = array<i32>} : memref<8x128xf32, #tpu.memory_space<vmem>>, vector<8x128xf32>,
    return
  }
  func.func @transform_0(%arg0: i32, %arg1: i32) -> (i32, i32) {
    %c0_i32 = arith.constant 0 : i32
    %c0_i32_0 = arith.constant 0 : i32
    return %arg0, %c0_i32 : i32, i32
  }
  func.func @transform_1(%arg0: i32, %arg1: i32) -> (i32, i32) {
    %c0_i32 = arith.constant 0 : i32
    %c0_i32_0 = arith.constant 0 : i32
    return %c0_i32, %arg1 : i32, i32
  }
  func.func @transform_2(%arg0: i32, %arg1: i32) -> (i32, i32) {
    %c0_i32 = arith.constant 0 : i32
    %c0_i32_0 = arith.constant 0 : i32
    return %c0_i32, %arg1 : i32, i32
  }
  func.func @transform_3(%arg0: i32, %arg1: i32) -> (i32, i32) {
    %c0_i32 = arith.constant 0 : i32
    return %arg0, %arg1 : i32, i32
  }
}

</mosaic_0001>

<bundles_post_ra>
// kernel: classifier_forward_pallas.1
= control target key start
LH: loop header
LB: loop body
LE: loop exit
PB: predicated region body
PF: predicated region fallthrough
CT: control target
= control target key end

     0   :  { %v159_v1 = vmov 0.0   ;;  %vm160_vm0 = vmmov 0   ;;  %s203_s0 = inlined_call_operand.vmem [shape: f32[8,32], index: 0, kind: input, shape index: {}]   ;;  %s204_s1 = inlined_call_operand.vmem [shape: f32[32,128], index: 1, kind: input, shape index: {}]   ;;  %s205_s2 = inlined_call_operand.vmem [shape: f32[1,128], index: 2, kind: input, shape index: {}]   ;;  %s206_s3 = inlined_call_operand.hbm [shape: f32[8,128], index: 3, kind: output, shape index: {}]  }
   0x1   :  { %v19_v0 = vld [vmem:[%s204_s1 + $0x18] sm:$0xff]  ;;  %123 = vmatprep.subr.mxu0 %v159_v1  ;;  %v18_v2 = vld [vmem:[%s204_s1 + $0x10] sm:$0xff]  ;;  %131 = vmatprep.mubr.msk.f32.mxu0 %vm160_vm0, %v159_v1 }
   0x2   :  { %124 = vmatpush3.msra.mxu0 %v19_v0 }
   0x3   :  { %8 = vsyncpa [#allocation3], 0  ;;  %125 = vmatprep.subr.mxu0 %v159_v1  ;;  %v17_v3 = vld [vmem:[%s204_s1 + $0x8] sm:$0xff]  ;;  %v16_v4 = vld [vmem:[%s204_s1] sm:$0xff]  ;;  %vm27_vm1 = vcmask 261120   ;;  %s161_s24 = smov [#allocation2]  }
   0x4   :  { %126 = vmatpush3.msra.mxu0 %v18_v2  ;;  %v15_v5 = vld [vmem:[%s203_s0] sm:$0xff]  ;;  %s108_s25 = sshll.u32 %s161_s24, 4  ;;  %s109_s25 = int_to_ptr.vmem [resolvable:$true] %s108_s25 }
   0x5   :  { %127 = vmatprep.subr.mxu0 %v159_v1  ;;  %v116_v6 = vld [vmem:[%s205_s2] ss:$0 sm:$0xff]  ;;  %s137_s1 = scalar_lea.vmem %s109_s25, 128  ;;  %p142_p1 = scmp.lt.s32.totalorder %s109_s25, %s109_s25 }
   0x6   :  { %128 = vmatpush3.msra.mxu0 %v17_v3  ;;  %p138_p0 = scmp.ne.s32.totalorder %s109_s25, %s137_s1  ;;  %p143_p2 = scmp.lt.s32.totalorder %s137_s1, %s137_s1 }
   0x7   :  { %129 = vmatprep.subr.mxu0 %v159_v1 }
   0x8   :  { %130 = vmatpush3.msra.mxu0 %v16_v4  ;;  %p144_p3 = por %p143_p2, %p142_p1 }
   0x9   :  { %132 = vmatmul.mubr.msk.f32.vlgmr.msra.gmra.mxu0 %vm27_vm1, %v15_v5 }
   0xa   :  { %p145_p4 = pnand %p144_p3, %p138_p0 }
  0xc9   :  { %v97_v7 = vpop.f32.mrf.mxu0 }
  0xca   :  { %v98_v8 = vadd.f32 %v116_v6, %v97_v7 }
  0xcb   :  { %v133_v9 = vpop.f32.mrf.mxu0 }
  0xcc   :  { %101 = vst [vmem:[#allocation2] sm:$0xff] %v98_v8 }
  0xcd   :  { %148 = shalt.err (!%p145_p4)
}
  0xce   :  { %111 = dma.vmem_to_hbm [thread:$0]  %s109_s25, 128, %s206_s3, [#allocation3]  }
  0xcf   :  { %157 = dma.done.wait [#allocation3], 128  }
  0xd0   :  { %158 = vsyncadd [#allocation3], 4294967168 }
  0xd1   :  { %115 = vsyncpa [#allocation3], 1 }

</bundles_post_ra>
